<compile_context>
chip_gen: v7x
topology: tpu7x:2x2x1
jax: 0.10.0
libtpu: 0.0.40
codegen_flags: <defaults>
</compile_context>

<pallas_src>
import functools

import numpy as np
import jax
import jax.numpy as jnp
from jax.experimental import pallas as pl
from jax.experimental.pallas import tpu as pltpu


def _make_compiler_params():
    # Size the VMEM budget per generation: v5e/v6e have 128 MiB, v7x only 64 MiB.
    cap = 64 * 1024 * 1024  # conservative fallback (v7x physical VMEM)
    try:
        info = pltpu.get_tpu_info()
        cap = int(getattr(info, "vmem_capacity_bytes", cap))
    except Exception:
        pass
    limit = max(32 * 1024 * 1024, min(cap * 3 // 4, 112 * 1024 * 1024))
    return pltpu.CompilerParams(
        dimension_semantics=("parallel",),  # batch axis -> megacore sharding on v7x
        vmem_limit_bytes=int(limit),
    )


_CP = _make_compiler_params()


# --------------------------------------------------------------------------
# 3x3 conv (padding=1) + optional ReLU.  One grid step per batch element.
# The conv is 9 shifted matmuls accumulated in a *register* accumulator
# (contraction over input channels on the MXU, f32 accumulation from bf16).
# The 3 column (kw) shifted slabs are hoisted so only 3 sublane-unaligned
# slices of the padded tile are materialized instead of 9.
# --------------------------------------------------------------------------
# TODO(synk): for large H*W add row-tiling with a 1-row halo (manual DMA /
# overlapping windows) so tiles stay within the per-generation VMEM budget;
# whole-image-per-batch blocks are fine at these shapes.
def _conv3x3_kernel(xp_ref, w_ref, b_ref, o_ref, *, H, W, Cin, Cout, relu):
    # xp_ref: (1, H+2, W+2, Cin) bf16   w_ref: (3, 3, Cin, Cout) bf16
    # b_ref:  (1, Cout) f32             o_ref: (1, H, W, Cout) bf16
    acc = jnp.zeros((H * W, Cout), jnp.float32)
    for kw in range(3):
        slab = xp_ref[0, :, kw:kw + W, :]          # (H+2, W, Cin) — one kw shift
        for kh in range(3):
            patch = slab[kh:kh + H].reshape(H * W, Cin)   # leading-dim slice: free
            acc += jnp.dot(patch, w_ref[kh, kw],
                           preferred_element_type=jnp.float32)
    r = acc + b_ref[0, :]
    if relu:
        r = jnp.maximum(r, 0.0)
    o_ref[0] = r.reshape(H, W, Cout).astype(o_ref.dtype)


def conv3x3(x, w, b, relu=True):
    # x: (B, H, W, Cin), w: (3, 3, Cin, Cout) (HWIO), b: (1, Cout)
    B, H, W, Cin = x.shape
    Cout = w.shape[-1]
    x = x.astype(jnp.bfloat16)
    w = w.astype(jnp.bfloat16)
    b = b.astype(jnp.float32).reshape(1, Cout)
    xp = jnp.pad(x, ((0, 0), (1, 1), (1, 1), (0, 0)))      # padded once, in bf16
    kern = functools.partial(_conv3x3_kernel, H=H, W=W, Cin=Cin, Cout=Cout, relu=relu)
    return pl.pallas_call(
        kern,
        out_shape=jax.ShapeDtypeStruct((B, H, W, Cout), jnp.bfloat16),
        grid=(B,),
        in_specs=[
            pl.BlockSpec((1, H + 2, W + 2, Cin), lambda bb: (bb, 0, 0, 0)),
            pl.BlockSpec((3, 3, Cin, Cout), lambda bb: (0, 0, 0, 0)),
            pl.BlockSpec((1, Cout), lambda bb: (0, 0)),
        ],
        out_specs=pl.BlockSpec((1, H, W, Cout), lambda bb: (bb, 0, 0, 0)),
        compiler_params=_CP,
    )(xp, w, b)


# --------------------------------------------------------------------------
# Bilinear upsample x2 with align_corners=True (F.upsample_bilinear semantics).
#   pass 1: W-axis interpolation — one lane-dense MXU matmul (Wo,W)@(W,C) per
#           input row, stored contiguously into a (H, Wo, C) VMEM scratch.
#   pass 2: H-axis interpolation — each output row is a static 2-tap weighted
#           sum of scratch rows (pure VPU, contiguous leading-dim loads/stores).
# --------------------------------------------------------------------------
def _bilinear_matrix_align_corners(n_in, n_out):
    m = np.zeros((n_out, n_in), dtype=np.float32)
    if n_in == 1 or n_out == 1:
        m[:, 0] = 1.0
        return m
    for i in range(n_out):
        src = i * (n_in - 1) / (n_out - 1)
        i0 = min(int(np.floor(src)), n_in - 1)
        i1 = min(i0 + 1, n_in - 1)
        a = src - i0
        m[i, i0] += 1.0 - a
        m[i, i1] += a
    return m


def _interp_taps_align_corners(n_in, n_out):
    taps = []
    for o in range(n_out):
        if n_in == 1 or n_out == 1:
            taps.append((0, 0, 0.0))
            continue
        src = o * (n_in - 1) / (n_out - 1)
        i0 = min(int(np.floor(src)), n_in - 1)
        i1 = min(i0 + 1, n_in - 1)
        taps.append((i0, i1, float(src - i0)))
    return tuple(taps)


def _upsample_kernel(ww_ref, x_ref, o_ref, y_scr, *, H, W, C, Ho, Wo, h_taps):
    # ww_ref: (Wo, W) f32   x_ref: (1, H, W, C) bf16
    # o_ref:  (1, Ho, Wo, C) bf16    y_scr: (H, Wo, C) f32
    ww = ww_ref[...]
    for h in range(H):                       # W-axis interpolation (MXU)
        row = x_ref[0, h].astype(jnp.float32)            # (W, C)
        y_scr[h] = jnp.dot(ww, row, preferred_element_type=jnp.float32)
    for o, (h0, h1, a) in enumerate(h_taps):  # H-axis interpolation (VPU, 2 taps)
        if h1 == h0 or a == 0.0:
            row = y_scr[h0]
        else:
            row = (1.0 - a) * y_scr[h0] + a * y_scr[h1]
        o_ref[0, o] = row.astype(o_ref.dtype)


def upsample_bilinear_x2(x):
    B, H, W, C = x.shape
    Ho, Wo = 2 * H, 2 * W
    ww = jnp.asarray(_bilinear_matrix_align_corners(W, Wo))   # (Wo, W) f32
    h_taps = _interp_taps_align_corners(H, Ho)
    kern = functools.partial(_upsample_kernel, H=H, W=W, C=C, Ho=Ho, Wo=Wo,
                             h_taps=h_taps)
    return pl.pallas_call(
        kern,
        out_shape=jax.ShapeDtypeStruct((B, Ho, Wo, C), jnp.bfloat16),
        grid=(B,),
        in_specs=[
            pl.BlockSpec((Wo, W), lambda bb: (0, 0)),
            pl.BlockSpec((1, H, W, C), lambda bb: (bb, 0, 0, 0)),
        ],
        out_specs=pl.BlockSpec((1, Ho, Wo, C), lambda bb: (bb, 0, 0, 0)),
        scratch_shapes=[pltpu.VMEM((H, Wo, C), jnp.float32)],
        compiler_params=_CP,
    )(ww, x.astype(jnp.bfloat16))


# --------------------------------------------------------------------------
# Fused reg2 (Conv 256->128, 3x3, pad 1, ReLU) + density_layer (1x1 conv 128->1,
# ReLU) + per-image normalization.  One grid step per batch element; the
# per-image sum never leaves the kernel.  Outputs are (B, H, W) — spatial last,
# no lane-width-1 channel dim.
# --------------------------------------------------------------------------
def _reg2_density_kernel(xp_ref, w_ref, b_ref, dw_ref, db_ref, mu_ref, mun_ref,
                         *, H, W, Cin, Cout):
    # xp_ref: (1, H+2, W+2, Cin) bf16   w_ref: (3, 3, Cin, Cout) bf16
    # b_ref/dw_ref: (1, Cout) f32       db_ref: (1, 1) f32
    acc = jnp.zeros((H * W, Cout), jnp.float32)
    for kw in range(3):
        slab = xp_ref[0, :, kw:kw + W, :]
        for kh in range(3):
            patch = slab[kh:kh + H].reshape(H * W, Cin)
            acc += jnp.dot(patch, w_ref[kh, kw],
                           preferred_element_type=jnp.float32)
    h = jnp.maximum(acc + b_ref[0, :], 0.0)                   # reg2 conv + ReLU
    h3 = h.reshape(H, W, Cout)
    # density 1x1 conv as a VPU multiply + lane reduce, then ReLU.
    mu = jnp.maximum(jnp.sum(h3 * dw_ref[0, :], axis=-1) + db_ref[0, :], 0.0)  # (H, W)
    inv = 1.0 / (jnp.sum(mu) + 1e-6)                          # per-image normalization
    mu_ref[0] = mu
    mun_ref[0] = mu * inv


def reg2_density(x, w, b, dw, db):
    B, H, W, Cin = x.shape
    Cout = w.shape[-1]
    xp = jnp.pad(x.astype(jnp.bfloat16), ((0, 0), (1, 1), (1, 1), (0, 0)))
    w = w.astype(jnp.bfloat16)
    b = b.astype(jnp.float32).reshape(1, Cout)
    dw = dw.astype(jnp.float32).reshape(1, Cout)
    db = db.astype(jnp.float32).reshape(1, 1)
    kern = functools.partial(_reg2_density_kernel, H=H, W=W, Cin=Cin, Cout=Cout)
    return pl.pallas_call(
        kern,
        out_shape=(jax.ShapeDtypeStruct((B, H, W), jnp.float32),
                   jax.ShapeDtypeStruct((B, H, W), jnp.float32)),
        grid=(B,),
        in_specs=[
            pl.BlockSpec((1, H + 2, W + 2, Cin), lambda bb: (bb, 0, 0, 0)),
            pl.BlockSpec((3, 3, Cin, Cout), lambda bb: (0, 0, 0, 0)),
            pl.BlockSpec((1, Cout), lambda bb: (0, 0)),
            pl.BlockSpec((1, Cout), lambda bb: (0, 0)),
            pl.BlockSpec((1, 1), lambda bb: (0, 0)),
        ],
        out_specs=(
            pl.BlockSpec((1, H, W), lambda bb: (bb, 0, 0)),
            pl.BlockSpec((1, H, W), lambda bb: (bb, 0, 0)),
        ),
        compiler_params=_CP,
    )(xp, w, b, dw, db)


# --------------------------------------------------------------------------
# Full forward (mirrors VGG.forward)
# --------------------------------------------------------------------------
def vgg_forward(x_nchw, params):
    x = jnp.transpose(x_nchw, (0, 2, 3, 1)).astype(jnp.bfloat16)      # NCHW -> NHWC
    # features (stand-in): Conv2d(3, 512, 3, padding=1) + ReLU
    x = conv3x3(x, params["feat_w"], params["feat_b"], relu=True)
    # F.upsample_bilinear(x, scale_factor=2)  (align_corners=True)
    x = upsample_bilinear_x2(x)
    # reg_layer[0:2]: Conv(512->256, 3, p1) + ReLU
    x = conv3x3(x, params["reg1_w"], params["reg1_b"], relu=True)
    # reg_layer[2:4] + density_layer + normalization, fused
    mu, mu_normed = reg2_density(x, params["reg2_w"], params["reg2_b"],
                                 params["den_w"], params["den_b"])
    B, Ho, Wo = mu.shape
    mu = mu.reshape(B, 1, Ho, Wo)                                     # NCHW, C=1
    mu_normed = mu_normed.reshape(B, 1, Ho, Wo)
    return mu, mu_normed


def init_params(key):
    ks = jax.random.split(key, 8)
    return {
        "feat_w": 0.05 * jax.random.normal(ks[0], (3, 3, 3, 512), jnp.float32),
        "feat_b": 0.01 * jnp.ones((1, 512), jnp.float32),
        "reg1_w": 0.02 * jax.random.normal(ks[1], (3, 3, 512, 256), jnp.float32),
        "reg1_b": 0.01 * jnp.ones((1, 256), jnp.float32),
        "reg2_w": 0.02 * jax.random.normal(ks[2], (3, 3, 256, 128), jnp.float32),
        "reg2_b": 0.01 * jnp.ones((1, 128), jnp.float32),
        "den_w": 0.05 * jax.random.normal(ks[3], (128, 1), jnp.float32),
        "den_b": 0.01 * jnp.ones((1, 1), jnp.float32),
    }


if __name__ == "__main__":
    key = jax.random.PRNGKey(0)
    k_x, k_p = jax.random.split(key)
    x = jax.random.normal(k_x, (2, 3, 8, 8), jnp.float32)   # NCHW, like PyTorch
    params = init_params(k_p)

    mu, mu_normed = vgg_forward(x, params)
    (mu, mu_normed) = jax.block_until_ready((mu, mu_normed))

    # shape / semantics checks (output spatial = 2x input spatial due to upsample)
    assert mu.shape == (2, 1, 16, 16), mu.shape
    assert mu_normed.shape == (2, 1, 16, 16), mu_normed.shape
    assert bool(jnp.all(jnp.isfinite(mu))) and bool(jnp.all(jnp.isfinite(mu_normed)))
    assert bool(jnp.all(mu >= 0.0)) and bool(jnp.all(mu_normed >= 0.0))
    s = jnp.sum(mu.reshape(2, -1), axis=1)
    got = jnp.sum(mu_normed.reshape(2, -1), axis=1)
    expected = s / (s + 1e-6)
    assert bool(jnp.allclose(got, expected, rtol=1e-3, atol=1e-5))

    print("KERNEL_OK")
</pallas_src>

<mosaic_0001>
module attributes {stable_mosaic.version = 11 : i64} {
  func.func @_conv3x3_kernel(%arg0: i32, %arg1: memref<1x10x10x3xbf16, #tpu.memory_space<vmem>>, %arg2: memref<3x3x3x512xbf16, #tpu.memory_space<vmem>>, %arg3: memref<1x512xf32, #tpu.memory_space<vmem>>, %arg4: memref<1x8x8x512xbf16, #tpu.memory_space<vmem>>) attributes {dimension_semantics = [#tpu.dimension_semantics<parallel>], iteration_bounds = array<i64: 2>, scalar_prefetch = 0 : i64, scratch_operands = 0 : i64, tpu.core_type = #tpu.core_type<tc>, window_params = [{transform_indices = @transform_0, window_bounds = array<i64: 1, 10, 10, 3>}, {pipeline_mode = #tpu.pipeline_mode<synchronous>, transform_indices = @transform_1, window_bounds = array<i64: 3, 3, 3, 512>}, {pipeline_mode = #tpu.pipeline_mode<synchronous>, transform_indices = @transform_2, window_bounds = array<i64: 1, 512>}, {transform_indices = @transform_3, window_bounds = array<i64: 1, 8, 8, 512>}]} {
    %cst = arith.constant 0.000000e+00 : f32
    %0 = vector.broadcast %cst : f32 to vector<64x512xf32>
    %c0 = arith.constant 0 : index
    %c0_0 = arith.constant 0 : index
    %c0_1 = arith.constant 0 : index
    %c0_2 = arith.constant 0 : index
    %1 = vector.load %arg1[%c0, %c0_0, %c0_1, %c0_2] : memref<1x10x10x3xbf16, #tpu.memory_space<vmem>>, vector<1x10x8x3xbf16>
    %2 = vector.shape_cast %1 : vector<1x10x8x3xbf16> to vector<10x8x3xbf16>
    %3 = vector.extract_strided_slice %2 {offsets = [0, 0, 0], sizes = [8, 8, 3], strides = [1, 1, 1]} : vector<10x8x3xbf16> to vector<8x8x3xbf16>
    %4 = vector.shape_cast %3 : vector<8x8x3xbf16> to vector<64x3xbf16>
    %c0_3 = arith.constant 0 : index
    %c0_4 = arith.constant 0 : index
    %c0_5 = arith.constant 0 : index
    %c0_6 = arith.constant 0 : index
    %5 = vector.load %arg2[%c0_3, %c0_4, %c0_5, %c0_6] : memref<3x3x3x512xbf16, #tpu.memory_space<vmem>>, vector<1x1x3x512xbf16>
    %6 = vector.shape_cast %5 : vector<1x1x3x512xbf16> to vector<3x512xbf16>
    %cst_7 = arith.constant dense<0.000000e+00> : vector<64x512xf32>
    %7 = tpu.matmul %4, %6, %cst_7 {dimension_numbers = #tpu.dot_dimension_numbers<[1], [0], [0], [1], [0, 0, 1, 1], [], []>} : vector<64x3xbf16>, vector<3x512xbf16>, vector<64x512xf32> -> vector<64x512xf32>
    %8 = arith.addf %0, %7 : vector<64x512xf32>
    %9 = vector.extract_strided_slice %2 {offsets = [1, 0, 0], sizes = [8, 8, 3], strides = [1, 1, 1]} : vector<10x8x3xbf16> to vector<8x8x3xbf16>
    %10 = vector.shape_cast %9 : vector<8x8x3xbf16> to vector<64x3xbf16>
    %c1 = arith.constant 1 : index
    %c0_8 = arith.constant 0 : index
    %c0_9 = arith.constant 0 : index
    %c0_10 = arith.constant 0 : index
    %11 = vector.load %arg2[%c1, %c0_8, %c0_9, %c0_10] : memref<3x3x3x512xbf16, #tpu.memory_space<vmem>>, vector<1x1x3x512xbf16>
    %12 = vector.shape_cast %11 : vector<1x1x3x512xbf16> to vector<3x512xbf16>
    %cst_11 = arith.constant dense<0.000000e+00> : vector<64x512xf32>
    %13 = tpu.matmul %10, %12, %cst_11 {dimension_numbers = #tpu.dot_dimension_numbers<[1], [0], [0], [1], [0, 0, 1, 1], [], []>} : vector<64x3xbf16>, vector<3x512xbf16>, vector<64x512xf32> -> vector<64x512xf32>
    %14 = arith.addf %8, %13 : vector<64x512xf32>
    %15 = vector.extract_strided_slice %2 {offsets = [2, 0, 0], sizes = [8, 8, 3], strides = [1, 1, 1]} : vector<10x8x3xbf16> to vector<8x8x3xbf16>
    %16 = vector.shape_cast %15 : vector<8x8x3xbf16> to vector<64x3xbf16>
    %c2 = arith.constant 2 : index
    %c0_12 = arith.constant 0 : index
    %c0_13 = arith.constant 0 : index
    %c0_14 = arith.constant 0 : index
    %17 = vector.load %arg2[%c2, %c0_12, %c0_13, %c0_14] : memref<3x3x3x512xbf16, #tpu.memory_space<vmem>>, vector<1x1x3x512xbf16>
    %18 = vector.shape_cast %17 : vector<1x1x3x512xbf16> to vector<3x512xbf16>
    %cst_15 = arith.constant dense<0.000000e+00> : vector<64x512xf32>
    %19 = tpu.matmul %16, %18, %cst_15 {dimension_numbers = #tpu.dot_dimension_numbers<[1], [0], [0], [1], [0, 0, 1, 1], [], []>} : vector<64x3xbf16>, vector<3x512xbf16>, vector<64x512xf32> -> vector<64x512xf32>
    %20 = arith.addf %14, %19 : vector<64x512xf32>
    %c0_16 = arith.constant 0 : index
    %c0_17 = arith.constant 0 : index
    %c1_18 = arith.constant 1 : index
    %c0_19 = arith.constant 0 : index
    %21 = vector.load %arg1[%c0_16, %c0_17, %c1_18, %c0_19] : memref<1x10x10x3xbf16, #tpu.memory_space<vmem>>, vector<1x10x8x3xbf16>
    %22 = vector.shape_cast %21 : vector<1x10x8x3xbf16> to vector<10x8x3xbf16>
    %23 = vector.extract_strided_slice %22 {offsets = [0, 0, 0], sizes = [8, 8, 3], strides = [1, 1, 1]} : vector<10x8x3xbf16> to vector<8x8x3xbf16>
    %24 = vector.shape_cast %23 : vector<8x8x3xbf16> to vector<64x3xbf16>
    %c0_20 = arith.constant 0 : index
    %c1_21 = arith.constant 1 : index
    %c0_22 = arith.constant 0 : index
    %c0_23 = arith.constant 0 : index
    %25 = vector.load %arg2[%c0_20, %c1_21, %c0_22, %c0_23] : memref<3x3x3x512xbf16, #tpu.memory_space<vmem>>, vector<1x1x3x512xbf16>
    %26 = vector.shape_cast %25 : vector<1x1x3x512xbf16> to vector<3x512xbf16>
    %cst_24 = arith.constant dense<0.000000e+00> : vector<64x512xf32>
    %27 = tpu.matmul %24, %26, %cst_24 {dimension_numbers = #tpu.dot_dimension_numbers<[1], [0], [0], [1], [0, 0, 1, 1], [], []>} : vector<64x3xbf16>, vector<3x512xbf16>, vector<64x512xf32> -> vector<64x512xf32>
    %28 = arith.addf %20, %27 : vector<64x512xf32>
    %29 = vector.extract_strided_slice %22 {offsets = [1, 0, 0], sizes = [8, 8, 3], strides = [1, 1, 1]} : vector<10x8x3xbf16> to vector<8x8x3xbf16>
    %30 = vector.shape_cast %29 : vector<8x8x3xbf16> to vector<64x3xbf16>
    %c1_25 = arith.constant 1 : index
    %c1_26 = arith.constant 1 : index
    %c0_27 = arith.constant 0 : index
    %c0_28 = arith.constant 0 : index
    %31 = vector.load %arg2[%c1_25, %c1_26, %c0_27, %c0_28] : memref<3x3x3x512xbf16, #tpu.memory_space<vmem>>, vector<1x1x3x512xbf16>
    %32 = vector.shape_cast %31 : vector<1x1x3x512xbf16> to vector<3x512xbf16>
    %cst_29 = arith.constant dense<0.000000e+00> : vector<64x512xf32>
    %33 = tpu.matmul %30, %32, %cst_29 {dimension_numbers = #tpu.dot_dimension_numbers<[1], [0], [0], [1], [0, 0, 1, 1], [], []>} : vector<64x3xbf16>, vector<3x512xbf16>, vector<64x512xf32> -> vector<64x512xf32>
    %34 = arith.addf %28, %33 : vector<64x512xf32>
    %35 = vector.extract_strided_slice %22 {offsets = [2, 0, 0], sizes = [8, 8, 3], strides = [1, 1, 1]} : vector<10x8x3xbf16> to vector<8x8x3xbf16>
    %36 = vector.shape_cast %35 : vector<8x8x3xbf16> to vector<64x3xbf16>
    %c2_30 = arith.constant 2 : index
    %c1_31 = arith.constant 1 : index
    %c0_32 = arith.constant 0 : index
    %c0_33 = arith.constant 0 : index
    %37 = vector.load %arg2[%c2_30, %c1_31, %c0_32, %c0_33] : memref<3x3x3x512xbf16, #tpu.memory_space<vmem>>, vector<1x1x3x512xbf16>
    %38 = vector.shape_cast %37 : vector<1x1x3x512xbf16> to vector<3x512xbf16>
    %cst_34 = arith.constant dense<0.000000e+00> : vector<64x512xf32>
    %39 = tpu.matmul %36, %38, %cst_34 {dimension_numbers = #tpu.dot_dimension_numbers<[1], [0], [0], [1], [0, 0, 1, 1], [], []>} : vector<64x3xbf16>, vector<3x512xbf16>, vector<64x512xf32> -> vector<64x512xf32>
    %40 = arith.addf %34, %39 : vector<64x512xf32>
    %c0_35 = arith.constant 0 : index
    %c0_36 = arith.constant 0 : index
    %c2_37 = arith.constant 2 : index
    %c0_38 = arith.constant 0 : index
    %41 = vector.load %arg1[%c0_35, %c0_36, %c2_37, %c0_38] : memref<1x10x10x3xbf16, #tpu.memory_space<vmem>>, vector<1x10x8x3xbf16>
    %42 = vector.shape_cast %41 : vector<1x10x8x3xbf16> to vector<10x8x3xbf16>
    %43 = vector.extract_strided_slice %42 {offsets = [0, 0, 0], sizes = [8, 8, 3], strides = [1, 1, 1]} : vector<10x8x3xbf16> to vector<8x8x3xbf16>
    %44 = vector.shape_cast %43 : vector<8x8x3xbf16> to vector<64x3xbf16>
    %c0_39 = arith.constant 0 : index
    %c2_40 = arith.constant 2 : index
    %c0_41 = arith.constant 0 : index
    %c0_42 = arith.constant 0 : index
    %45 = vector.load %arg2[%c0_39, %c2_40, %c0_41, %c0_42] : memref<3x3x3x512xbf16, #tpu.memory_space<vmem>>, vector<1x1x3x512xbf16>
    %46 = vector.shape_cast %45 : vector<1x1x3x512xbf16> to vector<3x512xbf16>
    %cst_43 = arith.constant dense<0.000000e+00> : vector<64x512xf32>
    %47 = tpu.matmul %44, %46, %cst_43 {dimension_numbers = #tpu.dot_dimension_numbers<[1], [0], [0], [1], [0, 0, 1, 1], [], []>} : vector<64x3xbf16>, vector<3x512xbf16>, vector<64x512xf32> -> vector<64x512xf32>
    %48 = arith.addf %40, %47 : vector<64x512xf32>
    %49 = vector.extract_strided_slice %42 {offsets = [1, 0, 0], sizes = [8, 8, 3], strides = [1, 1, 1]} : vector<10x8x3xbf16> to vector<8x8x3xbf16>
    %50 = vector.shape_cast %49 : vector<8x8x3xbf16> to vector<64x3xbf16>
    %c1_44 = arith.constant 1 : index
    %c2_45 = arith.constant 2 : index
    %c0_46 = arith.constant 0 : index
    %c0_47 = arith.constant 0 : index
    %51 = vector.load %arg2[%c1_44, %c2_45, %c0_46, %c0_47] : memref<3x3x3x512xbf16, #tpu.memory_space<vmem>>, vector<1x1x3x512xbf16>
    %52 = vector.shape_cast %51 : vector<1x1x3x512xbf16> to vector<3x512xbf16>
    %cst_48 = arith.constant dense<0.000000e+00> : vector<64x512xf32>
    %53 = tpu.matmul %50, %52, %cst_48 {dimension_numbers = #tpu.dot_dimension_numbers<[1], [0], [0], [1], [0, 0, 1, 1], [], []>} : vector<64x3xbf16>, vector<3x512xbf16>, vector<64x512xf32> -> vector<64x512xf32>
    %54 = arith.addf %48, %53 : vector<64x512xf32>
    %55 = vector.extract_strided_slice %42 {offsets = [2, 0, 0], sizes = [8, 8, 3], strides = [1, 1, 1]} : vector<10x8x3xbf16> to vector<8x8x3xbf16>
    %56 = vector.shape_cast %55 : vector<8x8x3xbf16> to vector<64x3xbf16>
    %c2_49 = arith.constant 2 : index
    %c2_50 = arith.constant 2 : index
    %c0_51 = arith.constant 0 : index
    %c0_52 = arith.constant 0 : index
    %57 = vector.load %arg2[%c2_49, %c2_50, %c0_51, %c0_52] : memref<3x3x3x512xbf16, #tpu.memory_space<vmem>>, vector<1x1x3x512xbf16>
    %58 = vector.shape_cast %57 : vector<1x1x3x512xbf16> to vector<3x512xbf16>
    %cst_53 = arith.constant dense<0.000000e+00> : vector<64x512xf32>
    %59 = tpu.matmul %56, %58, %cst_53 {dimension_numbers = #tpu.dot_dimension_numbers<[1], [0], [0], [1], [0, 0, 1, 1], [], []>} : vector<64x3xbf16>, vector<3x512xbf16>, vector<64x512xf32> -> vector<64x512xf32>
    %60 = arith.addf %54, %59 : vector<64x512xf32>
    %c0_54 = arith.constant 0 : index
    %c0_55 = arith.constant 0 : index
    %61 = vector.load %arg3[%c0_54, %c0_55] : memref<1x512xf32, #tpu.memory_space<vmem>>, vector<1x512xf32>
    %62 = vector.shape_cast %61 : vector<1x512xf32> to vector<512xf32>
    %63 = vector.shape_cast %62 : vector<512xf32> to vector<1x512xf32>
    %64 = vector.broadcast %63 : vector<1x512xf32> to vector<64x512xf32>
    %65 = arith.addf %60, %64 : vector<64x512xf32>
    %cst_56 = arith.constant 0.000000e+00 : f32
    %66 = vector.broadcast %cst_56 : f32 to vector<64x512xf32>
    %67 = arith.maximumf %65, %66 : vector<64x512xf32>
    %68 = vector.shape_cast %67 : vector<64x512xf32> to vector<8x8x512xf32>
    %69 = arith.truncf %68 : vector<8x8x512xf32> to vector<8x8x512xbf16>
    %c0_57 = arith.constant 0 : index
    %c0_58 = arith.constant 0 : index
    %c0_59 = arith.constant 0 : index
    %c0_60 = arith.constant 0 : index
    %70 = vector.load %arg4[%c0_57, %c0_58, %c0_59, %c0_60] : memref<1x8x8x512xbf16, #tpu.memory_space<vmem>>, vector<1x8x8x512xbf16>
    %71 = vector.shape_cast %70 : vector<1x8x8x512xbf16> to vector<8x8x512xbf16>
    %72 = vector.shape_cast %69 : vector<8x8x512xbf16> to vector<1x8x8x512xbf16>
    tpu.vector_store %arg4[%c0_57, %c0_58, %c0_59, %c0_60], %72 {strides = array<i32>} : memref<1x8x8x512xbf16, #tpu.memory_space<vmem>>, vector<1x8x8x512xbf16>,
    return
  }
  func.func @transform_0(%arg0: i32) -> (i32, i32, i32, i32) {
    %c0_i32 = arith.constant 0 : i32
    %c0_i32_0 = arith.constant 0 : i32
    %c0_i32_1 = arith.constant 0 : i32
    %c0_i32_2 = arith.constant 0 : i32
    return %arg0, %c0_i32, %c0_i32_0, %c0_i32_1 : i32, i32, i32, i32
  }
  func.func @transform_1(%arg0: i32) -> (i32, i32, i32, i32) {
    %c0_i32 = arith.constant 0 : i32
    %c0_i32_0 = arith.constant 0 : i32
    %c0_i32_1 = arith.constant 0 : i32
    %c0_i32_2 = arith.constant 0 : i32
    %c0_i32_3 = arith.constant 0 : i32
    return %c0_i32, %c0_i32_0, %c0_i32_1, %c0_i32_2 : i32, i32, i32, i32
  }
  func.func @transform_2(%arg0: i32) -> (i32, i32) {
    %c0_i32 = arith.constant 0 : i32
    %c0_i32_0 = arith.constant 0 : i32
    %c0_i32_1 = arith.constant 0 : i32
    return %c0_i32, %c0_i32_0 : i32, i32
  }
  func.func @transform_3(%arg0: i32) -> (i32, i32, i32, i32) {
    %c0_i32 = arith.constant 0 : i32
    %c0_i32_0 = arith.constant 0 : i32
    %c0_i32_1 = arith.constant 0 : i32
    %c0_i32_2 = arith.constant 0 : i32
    return %arg0, %c0_i32, %c0_i32_0, %c0_i32_1 : i32, i32, i32, i32
  }
}

</mosaic_0001>

<bundles_post_ra>
// kernel: tpu_custom_call.1
= control target key start
LH: loop header
LB: loop body
LE: loop exit
PB: predicated region body
PF: predicated region fallthrough
CT: control target
= control target key end

     0   :  { %8 = vsyncpa [#allocation3], 0  ;;  %s3873_s0 = inlined_call_operand.vmem [shape: bf16[2,10,10,3], index: 0, kind: input, shape index: {}]   ;;  %s3874_s1 = inlined_call_operand.vmem [shape: bf16[3,3,3,512], index: 1, kind: input, shape index: {}]   ;;  %s3875_s2 = inlined_call_operand.vmem [shape: f32[1,512], index: 2, kind: input, shape index: {}]   ;;  %s3876_s3 = inlined_call_operand.hbm [shape: bf16[2,8,8,512], index: 3, kind: output, shape index: {}]  }
   0x1   :  { %10 = vsyncpa [#allocation3 + $0x1], 0  ;;  %s3280_s12 = smov 0   ;;  %s3282_s13 = smov 0  }
   0x2   :  { %s3284_s14 = smov 0   ;;  %s3286_s15 = smov 0  }
   0x3 LB: > { %s3301_s16 = sadd.s32 4294967295, %s3252_s15   ;;  %s2710_s17 = sadd.s32 4294967294, %s3252_s15   ;;  %s3252_s15 = sphi %s3286_s15, %s3886_s15   ;;  %s3248_s14 = sphi %s3284_s14, %s3885_s14   ;;  %s3244_s13 = sphi %s3282_s13, %s3884_s13   ;;  %s3240_s12 = sphi %s3280_s12, %s3883_s12  }
   0x4   : > { %s3305_s18 = sadd.s32 1, %s3252_s15   ;;  %s91_s19 = sadd.s32 1, %s3248_s14 }
   0x5   : > { %s88_s20 = ssub.s32 %s3252_s15, %s3305_s18  ;;  %p101_p0 = scmp.ne.s32.totalorder %s3248_s14, %s3244_s13 }
   0x6   : > { %p89_p1 = scmp.eq.s32.totalorder %s88_s20, 0  ;;  %p102_p2 = scmp.eq.s32.totalorder %s3301_s16, 1 }
   0x7   : > { %p107_p3 = scmp.ne.s32.totalorder %s3244_s13, %s3240_s12  ;;  %p108_p4 = scmp.eq.s32.totalorder %s2710_s17, 1 }
   0x8   : > { %s3316_s21 = scalar_select %p89_p1, %s3248_s14, %s91_s19  }
   0x9   : > { %p3318_p5 = por %p102_p2, %p101_p0  ;;  %p3322_p6 = por %p108_p4, %p107_p3 }
   0xa   : > { %p2713_p7 = scmp.ge.s32.totalorder %s3252_s15, 1  ;;  %p140_p8 = scmp.lt.s32.totalorder %s3252_s15, 3 }
   0xc   : > { %p141_p9 = pnand %p2713_p7, %p140_p8 }
   0xd   : > { %v2716_v0 = vld [vmem:[%s3874_s1 + $0x18] sm:$0xff] (!%p141_p9)  ;;  %v208_v1 = vlaneseq (!%p141_p9)  ;;  %vm234_vm0 = vcmask (!%p141_p9), 1040384   ;;  %p164_p10 = scmp.lt.s32.totalorder (!%p141_p9), %s3301_s16, 1  ;;  %v3254_v2 = vmov (!%p141_p9), 1983009808   ;;  %v180_v4 = vld [vmem:[%s3874_s1] sm:$0xff] (!%p141_p9) }
   0xe   : > { %144 = sbr.rel (%p141_p9) target bundleno = 546 (0x222), region = 32  ;;  %v206_v3 = vunpack.c.l.s4 (!%p141_p9), %v3254_v2  ;;  %vm235_vm1 = vcmask (!%p141_p9), 1041408   ;;  %v3255_v6 = vmov (!%p141_p9), 0   ;;  %v2741_v7 = vld [vmem:[%s3874_s1 + $0x30] sm:$0xff] (!%p141_p9)  ;;  %v3256_v9 = vmov (!%p141_p9), 65535   ;;  %v2751_v47 = vld [vmem:[%s3874_s1 + $0x8] sm:$0xff] (!%p141_p9) }
   0xf   : > { %v3335_v5 = vshrl.u32 (!%p141_p9), %v208_v1, 7  ;;  %282 = vmatprep.mubr.bf16.mxu0 (!%p141_p9), %v3255_v6  ;;  %355 = vmatprep.mubr.bf16.mxu1 (!%p141_p9), %v3255_v6  ;;  %v236_v10 = vsel (!%p141_p9), %vm234_vm0, 4294967295, %v3256_v9  ;;  %v204_v11 = vcombine.high (!%p141_p9), %v2716_v0, %v2716_v0  ;;  %v403_v12 = vcombine.high (!%p141_p9), %v180_v4, %v180_v4  ;;  %s3257_s19 = smov (!%p141_p9), [#allocation2]  }
  0x10   : > { %v207_v8 = vunpack.c.0.s8 (!%p141_p9), %v206_v3  ;;  %v596_v14 = vcombine.high (!%p141_p9), %v2741_v7, %v2741_v7  ;;  %v3346_v15 = vsel (!%p141_p9), %vm235_vm1, %v236_v10, 0  ;;  %vm221_vm2 = vcmask (!%p141_p9), 23552   ;;  %s3194_s20 = sshll.u32 (!%p141_p9), %s3257_s19, 4  ;;  %s3195_s20 = int_to_ptr.vmem [resolvable:$false] %s3194_s20 }
  0x11   : > { %v956_v50 = vcombine.high (!%p141_p9), %v2751_v47, %v2751_v47  ;;  %vm826_vm3 = vsmask.f32 (!%p141_p9), 3328  ;;  %vm827_vm4 = vsmask.f32 (!%p141_p9), 7440  ;;  %vm1681_vm6 = vcmask (!%p141_p9), 1042432   ;;  %s3196_s24 = scalar_lea.vmem (!%p141_p9), %s3195_s20, 4096 }
  0x12   : > { %v3344_v13 = vsub.s32 (!%p141_p9), %v207_v8, %v3335_v5  ;;  %vm3475_vm5 = vmor (!%p141_p9), %vm826_vm3, %vm827_vm4  ;;  %vm1682_vm7 = vcmask (!%p141_p9), 1046532  }
  0x13   : > { %vm3643_vm8 = vmor (!%p141_p9), %vm1681_vm6, %vm1682_vm7 }
  0x14   : > { %v211_v16 = vrot.slane (!%p141_p9), %v2716_v0, %v3344_v13  ;;  %v218_v17 = vrot.slane (!%p141_p9), %v204_v11, %v3344_v13  ;;  %v410_v18 = vrot.slane (!%p141_p9), %v180_v4, %v3344_v13  ;;  %v417_v19 = vrot.slane (!%p141_p9), %v403_v12, %v3344_v13  ;;  %v2764_v0 = vld [vmem:[%s3874_s1 + $0x20] sm:$0xff] (!%p141_p9) }
  0x15   : > { %s165_s28 = scalar_select %p164_p10, %s3301_s16, 1  ;;  %v3358_v20 = vrot.slane %v2741_v7, %v3344_v13  ;;  %v3361_v23 = vrot.slane %v596_v14, %v3344_v13  ;;  %v963_v52 = vrot.slane %v2751_v47, %v3344_v13  ;;  %v970_v53 = vrot.slane %v956_v50, %v3344_v13 }
  0x16   : > { %v219_v21 = vcombine.high %v211_v16, %v211_v16  ;;  %v220_v22 = vcombine.high %v218_v17, %v218_v17  ;;  %v239_v24 = vand.u32 %v3346_v15, %v211_v16  ;;  %v245_v25 = vand.u32 %v3346_v15, %v218_v17 }
  0x17   : > { %s3127_s4 = smul.u32 80, %s165_s28  ;;  %v418_v28 = vcombine.high %v410_v18, %v410_v18  ;;  %v419_v29 = vcombine.high %v417_v19, %v417_v19  ;;  %v611_v34 = vcombine.high %v3358_v20, %v3358_v20  ;;  %v612_v36 = vcombine.high %v3361_v23, %v3361_v23 }
  0x18   : > { %v242_v30 = vand.u32 %v3346_v15, %v219_v21  ;;  %v248_v31 = vand.u32 %v3346_v15, %v220_v22  ;;  %v433_v37 = vand.u32 %v410_v18, %v3346_v15  ;;  %v439_v38 = vand.u32 %v417_v19, %v3346_v15 }
  0x19   : > { %s3353_s7 = scalar_lea.vmem %s3873_s0, %s3127_s4  ;;  %v436_v32 = vand.u32 %v418_v28, %v3346_v15  ;;  %v442_v33 = vand.u32 %v419_v29, %v3346_v15  ;;  %v620_v39 = vand.u32 %v611_v34, %v3346_v15  ;;  %v626_v40 = vand.u32 %v612_v36, %v3346_v15  ;;  %s161_s4 = sand.u32 1, %s3244_s13  }
  0x1a   : > { %v171_v26 = vld [vmem:[%s3353_s7 + $0x8] sm:$0xf]  ;;  %v3367_v27 = vld [vmem:[%s3353_s7 + $0x10] sm:$0xf]  ;;  %250 = vmatprep.subr.bf16.mxu0 %v242_v30  ;;  %323 = vmatprep.subr.bf16.mxu1 %v248_v31  ;;  %v173_v41 = vld [vmem:[%s3353_s7 + $0x18] sm:$0xf]  ;;  %v971_v55 = vcombine.high %v963_v52, %v963_v52  ;;  %v972_v56 = vcombine.high %v970_v53, %v970_v53  ;;  %v617_v58 = vand.u32 %v3358_v20, %v3346_v15 }
  0x1b   : > { %v2717_v35 = vcombine.low %v171_v26, %v3367_v27  ;;  %251 = vmatpush1.bf16.msra.mxu0 %v239_v24  ;;  %324 = vmatpush1.bf16.msra.mxu1 %v245_v25  ;;  %v174_v42 = vld [vmem:[%s3353_s7 + $0x20] sm:$0xf]  ;;  %v175_v44 = vld [vmem:[%s3353_s7 + $0x28] sm:$0xf]  ;;  %v176_v45 = vld [vmem:[%s3353_s7 + $0x30] sm:$0xf]  ;;  %v623_v59 = vand.u32 %v3361_v23, %v3346_v15  ;;  %v2730_v62 = vcombine.low %v3367_v27, %v173_v41 }
  0x1c   : > { %444 = vmatprep.subr.bf16.mxu0 %v436_v32  ;;  %517 = vmatprep.subr.bf16.mxu1 %v442_v33  ;;  %v2718_v43 = vcombine.low %v173_v41, %v174_v42  ;;  %v2719_v46 = vcombine.low %v175_v44, %v176_v45  ;;  %v177_v48 = vld [vmem:[%s3353_s7 + $0x38] sm:$0xf]  ;;  %v3403_v49 = vld [vmem:[%s3353_s7 + $0x40] sm:$0xf]  ;;  %v989_v60 = vand.u32 %v971_v55, %v3346_v15  ;;  %v808_v16 = vld [vmem:[%s3353_s7 + $0x8] sm:$0xf] }
  0x1d   : > { %v2720_v51 = vcombine.low %v177_v48, %v3403_v49  ;;  %v170_v54 = vld [vmem:[%s3353_s7] sm:$0xf]  ;;  %v995_v61 = vand.u32 %v972_v56, %v3346_v15  ;;  %v2731_v63 = vcombine.low %v174_v42, %v175_v44  ;;  %v1197_v1 = vcombine.high %v2764_v0, %v2764_v0  ;;  %v807_v23 = vld [vmem:[%s3353_s7 + $0x4] sm:$0x1]  ;;  %v809_v24 = vld [vmem:[%s3353_s7 + $0xc] sm:$0x1] }
  0x1e   : > { %2721 = vmatmul.mubr.msk.bf16.vlgmr.msra.gmra.mrb[0].mxu0 %vm221_vm2, %v2717_v35  ;;  %2725 = vmatmul.mubr.msk.bf16.vlgmr.msra.gmra.mrb[0].mxu1 %vm221_vm2, %v2717_v35  ;;  %v2729_v57 = vcombine.low %v170_v54, %v171_v26  ;;  %v2732_v2 = vcombine.low %v176_v45, %v177_v48  ;;  %v3436_v3 = vrot.slane %v2764_v0, %v3344_v13  ;;  %v806_v14 = vld [vmem:[%s3353_s7] sm:$0xf]  ;;  %v844_v19 = vshrl.u32 %v808_v16, 16  ;;  %v810_v27 = vld [vmem:[%s3353_s7 + $0x10] sm:$0xf]  ;;  %v2777_v35 = vld [vmem:[%s3874_s1 + $0x38] sm:$0xff] }
  0x1f   : > { %445 = vmatpush1.bf16.msra.mxu0 %v433_v37  ;;  %518 = vmatpush1.bf16.msra.mxu1 %v439_v38  ;;  %v3439_v4 = vrot.slane %v1197_v1, %v3344_v13  ;;  %v986_v9 = vand.u32 %v963_v52, %v3346_v15  ;;  %v992_v10 = vand.u32 %v970_v53, %v3346_v15  ;;  %v830_v17 = vshrl.u32 %v806_v14, 16  ;;  %v812_v31 = vld [vmem:[%s3353_s7 + $0x18] sm:$0xf]  ;;  %v179_v36 = vld [vmem:[%s3353_s7 + $0x48] sm:$0xf]  ;;  %s2714_s5 = sshll.u32 %s161_s4, 7 }
  0x20   : > { %292 = vmatprep.mubr.bf16.mxu0 %v3255_v6  ;;  %365 = vmatprep.mubr.bf16.mxu1 %v3255_v6  ;;  %v1212_v7 = vcombine.high %v3436_v3, %v3436_v3  ;;  %v833_v18 = vshll.u32 %v806_v14, 16  ;;  %v847_v20 = vshll.u32 %v808_v16, 16  ;;  %v846_v25 = vrot.slane %v844_v19, 4  ;;  %v811_v44 = vld [vmem:[%s3353_s7 + $0x14] sm:$0x1]  ;;  %s3779_s6 = scalar_lea.vmem [#allocation2], %s2714_s5 }
  0x21   : > { %628 = vmatprep.subr.bf16.mxu0 %v620_v39  ;;  %701 = vmatprep.subr.bf16.mxu1 %v626_v40  ;;  %v1213_v8 = vcombine.high %v3439_v4, %v3439_v4  ;;  %v832_v21 = vrot.slane %v830_v17, 4  ;;  %v839_v29 = vshll.u32 %v807_v23, 16  ;;  %v853_v30 = vshll.u32 %v809_v24, 16  ;;  %v814_v52 = vld [vmem:[%s3353_s7 + $0x20] sm:$0xf]  ;;  %s2648_s8 = sshll.u32 %s3779_s6, 4  ;;  %s3824_s8 = int_to_ptr.vmem [resolvable:$true] %s2648_s8 }
  0x22   : > { %v1230_v11 = vand.u32 %v1212_v7, %v3346_v15  ;;  %v835_v22 = vrot.slane %v833_v18, 5  ;;  %v849_v26 = vrot.slane %v847_v20, 5  ;;  %v858_v33 = vshrl.u32 %v810_v27, 16  ;;  %v816_v53 = vld [vmem:[%s3353_s7 + $0x28] sm:$0xf]  ;;  %s3190_s17 = scalar_lea.vmem %s3824_s8, 2048  ;;  %p3197_p0 = scmp.lt.s32.totalorder %s3824_s8, %s3195_s20 }
  0x23   : > { %v1236_v12 = vand.u32 %v1213_v8, %v3346_v15  ;;  %v861_v34 = vshll.u32 %v810_v27, 16  ;;  %v872_v37 = vshrl.u32 %v812_v31, 16  ;;  %v875_v38 = vshll.u32 %v812_v31, 16  ;;  %v813_v55 = vld [vmem:[%s3353_s7 + $0x1c] sm:$0x1]  ;;  %p3191_p11 = scmp.ne.s32.totalorder %s3824_s8, %s3190_s17  ;;  %p3198_p1 = scmp.lt.s32.totalorder %s3196_s24, %s3190_s17 }
  0x24   : > { %v836_v28 = vor.u32 %v835_v22, %v832_v21  ;;  %v850_v32 = vor.u32 %v849_v26, %v846_v25  ;;  %v841_v40 = vrot.slane %v839_v29, 5  ;;  %v855_v41 = vrot.slane %v853_v30, 5  ;;  %v817_v22 = vld [vmem:[%s3353_s7 + $0x2c] sm:$0x1]  ;;  %v818_v23 = vld [vmem:[%s3353_s7 + $0x30] sm:$0xf] }
  0x25   : > { %v860_v45 = vrot.slane %v858_v33, 4  ;;  %v1435_v47 = vcombine.high %v2777_v35, %v2777_v35  ;;  %v2742_v48 = vcombine.low %v3403_v49, %v179_v36  ;;  %v874_v50 = vrot.slane %v872_v37, 4  ;;  %v820_v24 = vld [vmem:[%s3353_s7 + $0x38] sm:$0xf]  ;;  %p3192_p12 = pnand %p3191_p11, %p3318_p5  ;;  %p3199_p2 = por %p3198_p1, %p3197_p0 }
  0x26   : > { %2722 = vmatmul.mubr.msk.bf16.gmra.mrb[4].mxu0 %vm221_vm2, %v2718_v43  ;;  %2726 = vmatmul.mubr.msk.bf16.gmra.mrb[4].mxu1 %vm221_vm2, %v2718_v43  ;;  %v837_v39 = vrot.slane %v836_v28, 4  ;;  %v851_v43 = vrot.slane %v850_v32, 4  ;;  %v867_v56 = vshll.u32 %v811_v44, 16  ;;  %v886_v49 = vshrl.u32 %v814_v52, 16 }
  0x27   : > { %302 = vmatprep.mubr.bf16.mxu0 %v3255_v6  ;;  %375 = vmatprep.mubr.bf16.mxu1 %v3255_v6  ;;  %v881_v1 = vshll.u32 %v813_v55, 16  ;;  %v1227_v18 = vand.u32 %v3436_v3, %v3346_v15  ;;  %v1233_v19 = vand.u32 %v3439_v4, %v3346_v15  ;;  %v909_v29 = vshll.u32 %v817_v22, 16  ;;  %p3193_p13 = pneg %p3192_p12 }
  0x28   : > { %v842_v54 = vsel %vm3475_vm5, %v837_v39, %v841_v40  ;;  %v869_v8 = vrot.slane %v867_v56, 5  ;;  %v914_v30 = vshrl.u32 %v818_v23, 16  ;;  %v917_v32 = vshll.u32 %v818_v23, 16 }
  0x29   : > { %v883_v21 = vrot.slane %v881_v1, 5  ;;  %v928_v33 = vshrl.u32 %v820_v24, 16  ;;  %p3200_p3 = pnand %p3199_p2, %p3193_p13 }
  0x2a   : > { %v916_v39 = vrot.slane %v914_v30, 4 }
  0x2b   : > { %v930_v44 = vrot.slane %v928_v33, 4 }
  0x2e   : > { %2723 = vmatmul.mubr.msk.bf16.gmra.mrb[8].mxu0 %vm221_vm2, %v2719_v46  ;;  %2727 = vmatmul.mubr.msk.bf16.gmra.mrb[8].mxu1 %vm221_vm2, %v2719_v46  ;;  %v863_v46 = vrot.slane %v861_v34, 5  ;;  %v931_v34 = vshll.u32 %v820_v24, 16 }
  0x2f   : > { %312 = vmatprep.mubr.bf16.mxu0 %v3255_v6  ;;  %385 = vmatprep.mubr.bf16.mxu1 %v3255_v6 }
  0x36   : > { %2724 = vmatmul.mubr.msk.bf16.gmra.mrb[12].mxu0 %vm221_vm2, %v2720_v51  ;;  %2728 = vmatmul.mubr.msk.bf16.gmra.mrb[12].mxu1 %vm221_vm2, %v2720_v51  ;;  %v877_v51 = vrot.slane %v875_v38, 5  ;;  %v911_v38 = vrot.slane %v909_v29, 5 }
  0x37   : > { %476 = vmatprep.mubr.bf16.mxu0 %v3255_v6  ;;  %549 = vmatprep.mubr.bf16.mxu1 %v3255_v6 }
  0x38   : > { %v878_v0 = vor.u32 %v877_v51, %v874_v50 }
  0x3a   : > { %v879_v20 = vrot.slane %v878_v0, 4 }
  0x3c   : > { %v3523_v31 = vsel %vm3475_vm5, %v879_v20, %v883_v21  ;;  %v823_v20 = vld [vmem:[%s3353_s7 + $0x44] sm:$0x1] }
  0x3d   : > { %v1185_v22 = vshll.u32 %v823_v20, 16 }
  0x3e   : > { %2733 = vmatmul.mubr.msk.bf16.vlgmr.msra.gmra.mrb[0].mxu0 %vm221_vm2, %v2729_v57  ;;  %2737 = vmatmul.mubr.msk.bf16.vlgmr.msra.gmra.mrb[0].mxu1 %vm221_vm2, %v2729_v57  ;;  %v3488_v57 = vsel %vm3475_vm5, %v851_v43, %v855_v41  ;;  %v819_v41 = vld [vmem:[%s3353_s7 + $0x34] sm:$0x1]  ;;  %v919_v43 = vrot.slane %v917_v32, 5 }
  0x3f   : > { %629 = vmatpush1.bf16.msra.mxu0 %v617_v58  ;;  %702 = vmatpush1.bf16.msra.mxu1 %v623_v59  ;;  %v864_v58 = vor.u32 %v863_v46, %v860_v45  ;;  %v3491_v59 = vrot.slane %v2777_v35, %v3344_v13  ;;  %v933_v45 = vrot.slane %v931_v34, 5  ;;  %v821_v46 = vld [vmem:[%s3353_s7 + $0x3c] sm:$0x1]  ;;  %v824_v34 = vld [vmem:[%s3353_s7 + $0x48] sm:$0xf] }
  0x40   : > { %486 = vmatprep.mubr.bf16.mxu0 %v3255_v6  ;;  %559 = vmatprep.mubr.bf16.mxu1 %v3255_v6  ;;  %v920_v51 = vor.u32 %v919_v43, %v916_v39  ;;  %v1420_v39 = vshll.u32 %v824_v34, 16  ;;  %v825_v43 = vld [vmem:[%s3353_s7 + $0x4c] sm:$0x1] }
  0x41   : > { %997 = vmatprep.subr.bf16.mxu0 %v989_v60  ;;  %1070 = vmatprep.subr.bf16.mxu1 %v995_v61  ;;  %v3494_v60 = vrot.slane %v1435_v47, %v3344_v13  ;;  %v889_v61 = vshll.u32 %v814_v52, 16  ;;  %v865_v7 = vrot.slane %v864_v58, 4  ;;  %v934_v52 = vor.u32 %v933_v45, %v930_v44 }
  0x42   : > { %v921_v55 = vrot.slane %v920_v51, 4  ;;  %v1426_v44 = vshll.u32 %v825_v43, 16  ;;  %v1646_v51 = vld [vmem:[%s3353_s7 + $0x4] sm:$0x1] }
  0x43   : > { %v891_v14 = vrot.slane %v889_v61, 5  ;;  %v3515_v25 = vsel %vm3475_vm5, %v865_v7, %v869_v8  ;;  %v935_v58 = vrot.slane %v934_v52, 4  ;;  %v2795_v61 = vld [vmem:[%s3874_s1 + $0x10] sm:$0xff]  ;;  %v1647_v52 = vld [vmem:[%s3353_s7 + $0x8] sm:$0xe] }
  0x44   : > { %v3529_v36 = vcombine.low %v3515_v25, %v3523_v31  ;;  %v1731_v0 = vcombine.high %v2795_v61, %v2795_v61 }
  0x46   : > { %2734 = vmatmul.mubr.msk.bf16.gmra.mrb[4].mxu0 %vm221_vm2, %v2730_v62  ;;  %2738 = vmatmul.mubr.msk.bf16.gmra.mrb[4].mxu1 %vm221_vm2, %v2730_v62  ;;  %v1745_v7 = vrot.slane %v1731_v0, %v3344_v13 }
  0x47   : > { %496 = vmatprep.mubr.bf16.mxu0 %v3255_v6  ;;  %569 = vmatprep.mubr.bf16.mxu1 %v3255_v6 }
  0x48   : > { %v1767_v33 = vand.u32 %v1745_v7, %v3346_v15 }
  0x4e   : > { %2735 = vmatmul.mubr.msk.bf16.gmra.mrb[8].mxu0 %vm221_vm2, %v2731_v63  ;;  %2739 = vmatmul.mubr.msk.bf16.gmra.mrb[8].mxu1 %vm221_vm2, %v2731_v63 }
  0x4f   : > { %506 = vmatprep.mubr.bf16.mxu0 %v3255_v6  ;;  %579 = vmatprep.mubr.bf16.mxu1 %v3255_v6 }
  0x56   : > { %2736 = vmatmul.mubr.msk.bf16.gmra.mrb[12].mxu0 %vm221_vm2, %v2732_v2  ;;  %2740 = vmatmul.mubr.msk.bf16.gmra.mrb[12].mxu1 %vm221_vm2, %v2732_v2 }
  0x57   : > { %660 = vmatprep.mubr.bf16.mxu0 %v3255_v6  ;;  %733 = vmatprep.mubr.bf16.mxu1 %v3255_v6 }
  0x5e   : > { %2743 = vmatmul.mubr.msk.bf16.vlgmr.msra.gmra.mrb[0].mxu0 %vm221_vm2, %v2730_v62  ;;  %2747 = vmatmul.mubr.msk.bf16.vlgmr.msra.gmra.mrb[0].mxu1 %vm221_vm2, %v2730_v62  ;;  %v900_v62 = vshrl.u32 %v816_v53, 16 }
  0x5f   : > { %998 = vmatpush1.bf16.msra.mxu0 %v986_v9  ;;  %1071 = vmatpush1.bf16.msra.mxu1 %v992_v10  ;;  %v1450_v9 = vcombine.high %v3491_v59, %v3491_v59  ;;  %v1451_v10 = vcombine.high %v3494_v60, %v3494_v60 }
  0x60   : > { %670 = vmatprep.mubr.bf16.mxu0 %v3255_v6  ;;  %743 = vmatprep.mubr.bf16.mxu1 %v3255_v6  ;;  %v902_v16 = vrot.slane %v900_v62, 4 }
  0x61   : > { %1238 = vmatprep.subr.bf16.mxu0 %v1230_v11  ;;  %1311 = vmatprep.subr.bf16.mxu1 %v1236_v12  ;;  %v815_v11 = vld [vmem:[%s3353_s7 + $0x24] sm:$0x1]  ;;  %v888_v12 = vrot.slane %v886_v49, 4  ;;  %v1459_v27 = vand.u32 %v1450_v9, %v3346_v15  ;;  %v1465_v28 = vand.u32 %v1451_v10, %v3346_v15  ;;  %v1747_v9 = vcombine.high %v1745_v7, %v1745_v7  ;;  %v1650_v7 = vld [vmem:[%s3353_s7 + $0x14] sm:$0x1] }
  0x62   : > { %v895_v26 = vshll.u32 %v815_v11, 16  ;;  %v2765_v10 = vcombine.low %v3488_v57, %v3515_v25  ;;  %v1456_v11 = vand.u32 %v3491_v59, %v3346_v15  ;;  %v1187_v25 = vrot.slane %v1185_v22, 5  ;;  %v1654_v22 = vld [vmem:[%s3353_s7 + $0x24] sm:$0x1] }
  0x63   : > { %v892_v3 = vor.u32 %v891_v14, %v888_v12  ;;  %v1462_v12 = vand.u32 %v3494_v60, %v3346_v15  ;;  %v822_v14 = vld [vmem:[%s3353_s7 + $0x40] sm:$0xf] }
  0x64   : > { %v897_v35 = vrot.slane %v895_v26, 5  ;;  %v2809_v26 = vld [vmem:[%s3874_s1 + $0x28] sm:$0xff] }
  0x65   : > { %v893_v37 = vrot.slane %v892_v3, 4 }
  0x66   : > { %2744 = vmatmul.mubr.msk.bf16.gmra.mrb[4].mxu0 %vm221_vm2, %v2731_v63  ;;  %2748 = vmatmul.mubr.msk.bf16.gmra.mrb[4].mxu1 %vm221_vm2, %v2731_v63  ;;  %v903_v63 = vshll.u32 %v816_v53, 16  ;;  %v937_v53 = vshll.u32 %v821_v46, 16  ;;  %v1428_v46 = vrot.slane %v1426_v44, 5 }
  0x67   : > { %680 = vmatprep.mubr.bf16.mxu0 %v3255_v6  ;;  %753 = vmatprep.mubr.bf16.mxu1 %v3255_v6  ;;  %v898_v47 = vsel %vm3475_vm5, %v893_v37, %v897_v35 }
  0x68   : > { %v905_v17 = vrot.slane %v903_v63, 5  ;;  %v939_v49 = vrot.slane %v937_v53, 5  ;;  %v2766_v59 = vcombine.low %v3523_v31, %v898_v47  ;;  %v1648_v53 = vld [vmem:[%s3353_s7 + $0xc] sm:$0x1] }
  0x6a   : > { %v906_v4 = vor.u32 %v905_v17, %v902_v16  ;;  %v940_v63 = vsel %vm3475_vm5, %v935_v58, %v939_v49  ;;  %v1770_v17 = vand.u32 %v1747_v9, %v3346_v15  ;;  %v1686_v58 = vrot.slane %v1646_v51, 5  ;;  %v1652_v9 = vld [vmem:[%s3353_s7 + $0x1c] sm:$0x1] }
  0x6b   : > { %v2788_v49 = vrot.slane %v1647_v52, 9 }
  0x6c   : > { %v907_v40 = vrot.slane %v906_v4, 4  ;;  %v3597_v4 = vrot.slane %v2809_v26, %v3344_v13 }
  0x6e   : > { %2745 = vmatmul.mubr.msk.bf16.gmra.mrb[8].mxu0 %vm221_vm2, %v2732_v2  ;;  %2749 = vmatmul.mubr.msk.bf16.gmra.mrb[8].mxu1 %vm221_vm2, %v2732_v2  ;;  %v2752_v2 = vcombine.low %v842_v54, %v3488_v57  ;;  %v912_v50 = vsel %vm3475_vm5, %v907_v40, %v911_v38  ;;  %v1179_v57 = vshll.u32 %v822_v14, 16  ;;  %v1979_v30 = vcombine.high %v3597_v4, %v3597_v4 }
  0x6f   : > { %690 = vmatprep.mubr.bf16.mxu0 %v3255_v6  ;;  %763 = vmatprep.mubr.bf16.mxu1 %v3255_v6  ;;  %v3543_v54 = vcombine.low %v898_v47, %v912_v50  ;;  %v1417_v38 = vshrl.u32 %v824_v34, 16  ;;  %v2823_v47 = vld [vmem:[%s3874_s1 + $0x40] sm:$0xff] }
  0x70   : > { %v1997_v35 = vand.u32 %v1979_v30, %v3346_v15  ;;  %v3648_v42 = vrot.slane %v2823_v47, %v3344_v13  ;;  %v1657_v30 = vld [vmem:[%s3353_s7 + $0x30] sm:$0xe] }
  0x71   : > { %v1419_v40 = vrot.slane %v1417_v38, 4 }
  0x72   : > { %v2215_v44 = vand.u32 %v3648_v42, %v3346_v15 }
  0x76   : > { %2746 = vmatmul.mubr.msk.bf16.gmra.mrb[12].mxu0 %vm221_vm2, %v2742_v48  ;;  %2750 = vmatmul.mubr.msk.bf16.gmra.mrb[12].mxu1 %vm221_vm2, %v2742_v48  ;;  %v923_v48 = vshll.u32 %v819_v41, 16  ;;  %v1422_v41 = vrot.slane %v1420_v39, 5 }
  0x77   : > { %1029 = vmatprep.mubr.bf16.mxu0 %v3255_v6  ;;  %1102 = vmatprep.mubr.bf16.mxu1 %v3255_v6 }
  0x78   : > { %v925_v56 = vrot.slane %v923_v48, 5 }
  0x7a   : > { %v926_v62 = vsel %vm3475_vm5, %v921_v55, %v925_v56 }
  0x7b   : > { %v3558_v1 = vcombine.low %v926_v62, %v940_v63  ;;  %v2767_v23 = vcombine.low %v912_v50, %v926_v62  ;;  %v1645_v50 = vld [vmem:[%s3353_s7] sm:$0xe] }
  0x7c   : > { %v2787_v56 = vrot.slane %v1645_v50, 9 }
  0x7e   : > { %2756 = vmatmul.mubr.msk.bf16.vlgmr.msra.gmra.mrb[0].mxu0 %vm221_vm2, %v2752_v2  ;;  %2760 = vmatmul.mubr.msk.bf16.vlgmr.msra.gmra.mrb[0].mxu1 %vm221_vm2, %v2752_v2  ;;  %v1738_v2 = vrot.slane %v2795_v61, %v3344_v13  ;;  %v1690_v61 = vrot.slane %v1648_v53, 5  ;;  %v1687_v0 = vsel %vm3643_vm8, %v2787_v56, %v1686_v58 }
  0x7f   : > { %1239 = vmatpush1.bf16.msra.mxu0 %v1227_v18  ;;  %1312 = vmatpush1.bf16.msra.mxu1 %v1233_v19  ;;  %v1176_v18 = vshrl.u32 %v822_v14, 16  ;;  %v1181_v19 = vrot.slane %v1179_v57, 5  ;;  %v1698_v57 = vrot.slane %v1652_v9, 5 }
  0x80   : > { %1039 = vmatprep.mubr.bf16.mxu0 %v3255_v6  ;;  %1112 = vmatprep.mubr.bf16.mxu1 %v3255_v6  ;;  %v1746_v8 = vcombine.high %v1738_v2, %v1738_v2  ;;  %v1761_v32 = vand.u32 %v1738_v2, %v3346_v15  ;;  %v1649_v2 = vld [vmem:[%s3353_s7 + $0x10] sm:$0xe] }
  0x81   : > { %1467 = vmatprep.subr.bf16.mxu0 %v1459_v27  ;;  %1540 = vmatprep.subr.bf16.mxu1 %v1465_v28  ;;  %v1178_v60 = vrot.slane %v1176_v18, 4  ;;  %v1964_v28 = vcombine.high %v2809_v26, %v2809_v26  ;;  %v2789_v14 = vrot.slane %v1649_v2, 9 }
  0x82   : > { %v1764_v16 = vand.u32 %v1746_v8, %v3346_v15  ;;  %v1651_v8 = vld [vmem:[%s3353_s7 + $0x18] sm:$0xe] }
  0x83   : > { %v1182_v21 = vor.u32 %v1181_v19, %v1178_v60  ;;  %v3600_v29 = vrot.slane %v1964_v28, %v3344_v13  ;;  %v2790_v18 = vrot.slane %v1651_v8, 9 }
  0x85   : > { %v1183_v24 = vrot.slane %v1182_v21, 4  ;;  %v1980_v31 = vcombine.high %v3600_v29, %v3600_v29  ;;  %v1699_v20 = vsel %vm3643_vm8, %v2790_v18, %v1698_v57  ;;  %v1653_v21 = vld [vmem:[%s3353_s7 + $0x20] sm:$0xe] }
  0x86   : > { %2757 = vmatmul.mubr.msk.bf16.gmra.mrb[4].mxu0 %vm221_vm2, %v3529_v36  ;;  %2761 = vmatmul.mubr.msk.bf16.gmra.mrb[4].mxu1 %vm221_vm2, %v3529_v36  ;;  %v2791_v26 = vrot.slane %v1653_v21, 9 }
  0x87   : > { %1049 = vmatprep.mubr.bf16.mxu0 %v3255_v6  ;;  %1122 = vmatprep.mubr.bf16.mxu1 %v3255_v6  ;;  %v1188_v27 = vsel %vm3475_vm5, %v1183_v24, %v1187_v25  ;;  %v2003_v37 = vand.u32 %v1980_v31, %v3346_v15  ;;  %v1656_v24 = vld [vmem:[%s3353_s7 + $0x2c] sm:$0x1]  ;;  %v1658_v31 = vld [vmem:[%s3353_s7 + $0x34] sm:$0x1] }
  0x88   : > { %v2768_v3 = vcombine.low %v940_v63, %v1188_v27 }
  0x8e   : > { %2758 = vmatmul.mubr.msk.bf16.gmra.mrb[8].mxu0 %vm221_vm2, %v3543_v54  ;;  %2762 = vmatmul.mubr.msk.bf16.gmra.mrb[8].mxu1 %vm221_vm2, %v3543_v54 }
  0x8f   : > { %1059 = vmatprep.mubr.bf16.mxu0 %v3255_v6  ;;  %1132 = vmatprep.mubr.bf16.mxu1 %v3255_v6 }
  0x96   : > { %2759 = vmatmul.mubr.msk.bf16.gmra.mrb[12].mxu0 %vm221_vm2, %v3558_v1  ;;  %2763 = vmatmul.mubr.msk.bf16.gmra.mrb[12].mxu1 %vm221_vm2, %v3558_v1 }
  0x97   : > { %1270 = vmatprep.mubr.bf16.mxu0 %v3255_v6  ;;  %1343 = vmatprep.mubr.bf16.mxu1 %v3255_v6 }
  0x9e   : > { %2769 = vmatmul.mubr.msk.bf16.vlgmr.msra.gmra.mrb[0].mxu0 %vm221_vm2, %v2765_v10  ;;  %2773 = vmatmul.mubr.msk.bf16.vlgmr.msra.gmra.mrb[0].mxu1 %vm221_vm2, %v2765_v10 }
  0x9f   : > { %1468 = vmatpush1.bf16.msra.mxu0 %v1456_v11  ;;  %1541 = vmatpush1.bf16.msra.mxu1 %v1462_v12  ;;  %v1994_v12 = vand.u32 %v3597_v4, %v3346_v15 }
  0xa0   : > { %1280 = vmatprep.mubr.bf16.mxu0 %v3255_v6  ;;  %1353 = vmatprep.mubr.bf16.mxu1 %v3255_v6 }
  0xa1   : > { %1772 = vmatprep.subr.bf16.mxu0 %v1764_v16  ;;  %1845 = vmatprep.subr.bf16.mxu1 %v1770_v17  ;;  %v2000_v16 = vand.u32 %v3600_v29, %v3346_v15  ;;  %v1694_v17 = vrot.slane %v1650_v7, 5 }
  0xa3   : > { %v1695_v19 = vsel %vm3643_vm8, %v2789_v14, %v1694_v17 }
  0xa4   : > { %v2797_v25 = vcombine.low %v1695_v19, %v1699_v20 }
  0xa6   : > { %2770 = vmatmul.mubr.msk.bf16.gmra.mrb[4].mxu0 %vm221_vm2, %v2766_v59  ;;  %2774 = vmatmul.mubr.msk.bf16.gmra.mrb[4].mxu1 %vm221_vm2, %v2766_v59 }
  0xa7   : > { %1290 = vmatprep.mubr.bf16.mxu0 %v3255_v6  ;;  %1363 = vmatprep.mubr.bf16.mxu1 %v3255_v6 }
  0xae   : > { %2771 = vmatmul.mubr.msk.bf16.gmra.mrb[8].mxu0 %vm221_vm2, %v2767_v23  ;;  %2775 = vmatmul.mubr.msk.bf16.gmra.mrb[8].mxu1 %vm221_vm2, %v2767_v23  ;;  %v1655_v23 = vld [vmem:[%s3353_s7 + $0x28] sm:$0xe] }
  0xaf   : > { %1300 = vmatprep.mubr.bf16.mxu0 %v3255_v6  ;;  %1373 = vmatprep.mubr.bf16.mxu1 %v3255_v6  ;;  %v2792_v28 = vrot.slane %v1655_v23, 9 }
  0xb6   : > { %2772 = vmatmul.mubr.msk.bf16.gmra.mrb[12].mxu0 %vm221_vm2, %v2768_v3  ;;  %2776 = vmatmul.mubr.msk.bf16.gmra.mrb[12].mxu1 %vm221_vm2, %v2768_v3  ;;  %v1706_v3 = vrot.slane %v1656_v24, 5 }
  0xb7   : > { %1499 = vmatprep.mubr.bf16.mxu0 %v3255_v6  ;;  %1572 = vmatprep.mubr.bf16.mxu1 %v3255_v6 }
  0xb8   : > { %v1707_v29 = vsel %vm3643_vm8, %v2792_v28, %v1706_v3 }
  0xbe   : > { %2779 = vmatmul.mubr.msk.bf16.vlgmr.msra.gmra.mrb[0].mxu0 %vm221_vm2, %v3529_v36  ;;  %2783 = vmatmul.mubr.msk.bf16.vlgmr.msra.gmra.mrb[0].mxu1 %vm221_vm2, %v3529_v36  ;;  %v1423_v36 = vor.u32 %v1422_v41, %v1419_v40 }
  0xbf   : > { %1773 = vmatpush1.bf16.msra.mxu0 %v1761_v32  ;;  %1846 = vmatpush1.bf16.msra.mxu1 %v1767_v33  ;;  %v1659_v32 = vld [vmem:[%s3353_s7 + $0x38] sm:$0xe]  ;;  %v1660_v33 = vld [vmem:[%s3353_s7 + $0x3c] sm:$0x1] }
  0xc0   : > { %1509 = vmatprep.mubr.bf16.mxu0 %v3255_v6  ;;  %1582 = vmatprep.mubr.bf16.mxu1 %v3255_v6  ;;  %v1424_v45 = vrot.slane %v1423_v36, 4  ;;  %v2794_v38 = vrot.slane %v1659_v32, 9  ;;  %v1714_v39 = vrot.slane %v1660_v33, 5 }
  0xc1   : > { %2005 = vmatprep.subr.bf16.mxu0 %v1997_v35  ;;  %2078 = vmatprep.subr.bf16.mxu1 %v2003_v37  ;;  %v2793_v35 = vrot.slane %v1657_v30, 9  ;;  %v1710_v37 = vrot.slane %v1658_v31, 5 }
  0xc2   : > { %v1429_v48 = vsel %vm3475_vm5, %v1424_v45, %v1428_v46  ;;  %v1715_v41 = vsel %vm3643_vm8, %v2794_v38, %v1714_v39 }
  0xc3   : > { %v2778_v55 = vcombine.low %v1188_v27, %v1429_v48  ;;  %v1702_v27 = vrot.slane %v1654_v22, 5  ;;  %v1711_v40 = vsel %vm3643_vm8, %v2793_v35, %v1710_v37 }
  0xc4   : > { %v2799_v43 = vcombine.low %v1711_v40, %v1715_v41  ;;  %v2812_v48 = vcombine.low %v1707_v29, %v1711_v40 }
  0xc5   : > { %v1703_v4 = vsel %vm3643_vm8, %v2791_v26, %v1702_v27 }
  0xc6   : > { %2780 = vmatmul.mubr.msk.bf16.gmra.mrb[4].mxu0 %vm221_vm2, %v3543_v54  ;;  %2784 = vmatmul.mubr.msk.bf16.gmra.mrb[4].mxu1 %vm221_vm2, %v3543_v54  ;;  %v2194_v54 = vcombine.high %v2823_v47, %v2823_v47  ;;  %v2798_v34 = vcombine.low %v1703_v4, %v1707_v29  ;;  %v2811_v46 = vcombine.low %v1699_v20, %v1703_v4  ;;  %v1662_v47 = vld [vmem:[%s3353_s7 + $0x44] sm:$0x1] }
  0xc7   : > { %1519 = vmatprep.mubr.bf16.mxu0 %v3255_v6  ;;  %1592 = vmatprep.mubr.bf16.mxu1 %v3255_v6  ;;  %v1954_v51 = vrot.slane %v1662_v47, 5 }
  0xc8   : > { %v3651_v63 = vrot.slane %v2194_v54, %v3344_v13  ;;  %v2209_v13 = vcombine.high %v3648_v42, %v3648_v42  ;;  %v1663_v54 = vld [vmem:[%s3353_s7 + $0x48] sm:$0xe]  ;;  %v2408_v42 = vsub.s32 0, %v3335_v5 }
  0xc9   : > { %v2822_v56 = vrot.slane %v1663_v54, 9 }
  0xca   : > { %v2210_v10 = vcombine.high %v3651_v63, %v3651_v63  ;;  %v2218_v59 = vand.u32 %v2209_v13, %v3346_v15  ;;  %v2221_v45 = vand.u32 %v3651_v63, %v3346_v15  ;;  %v2416_v63 = vsub.s32 2, %v3335_v5 }
  0xcc   : > { %v2224_v60 = vand.u32 %v2210_v10, %v3346_v15  ;;  %v1661_v15 = vld [vmem:[%s3353_s7 + $0x40] sm:$0xe] }
  0xcd   : > { %v2808_v50 = vrot.slane %v1661_v15, 9 }
  0xce   : > { %2781 = vmatmul.mubr.msk.bf16.gmra.mrb[8].mxu0 %vm221_vm2, %v3558_v1  ;;  %2785 = vmatmul.mubr.msk.bf16.gmra.mrb[8].mxu1 %vm221_vm2, %v3558_v1  ;;  %v1691_v1 = vsel %vm3643_vm8, %v2788_v49, %v1690_v61 }
  0xcf   : > { %1529 = vmatprep.mubr.bf16.mxu0 %v3255_v6  ;;  %1602 = vmatprep.mubr.bf16.mxu1 %v3255_v6  ;;  %v2796_v11 = vcombine.low %v1687_v0, %v1691_v1  ;;  %v2810_v36 = vcombine.low %v1691_v1, %v1695_v19  ;;  %v1955_v52 = vsel %vm3643_vm8, %v2808_v50, %v1954_v51  ;;  %v2404_v0 = vld [vmem:[%s3875_s2] sm:$0xf]  ;;  %v2412_v1 = vsub.s32 1, %v3335_v5 }
  0xd0   : > { %v2813_v53 = vcombine.low %v1715_v41, %v1955_v52  ;;  %v3760_v62 = vrot.slane %v2404_v0, %v2408_v42  ;;  %v3762_v2 = vrot.slane %v2404_v0, %v2416_v63 }
  0xd1   : > { %v3764_v7 = vrot.slane %v2404_v0, %v2412_v1 }
  0xd6   : > { %2782 = vmatmul.mubr.msk.bf16.gmra.mrb[12].mxu0 %vm221_vm2, %v2778_v55  ;;  %2786 = vmatmul.mubr.msk.bf16.gmra.mrb[12].mxu1 %vm221_vm2, %v2778_v55  ;;  %v1664_v55 = vld [vmem:[%s3353_s7 + $0x4c] sm:$0x1]  ;;  %s2870_s7 = sshll.u32 %s3301_s16, 11  ;;  %s3832_s16 = scalar_lea.sflag [#allocation3], %s161_s4 }
  0xd7   : > { %1804 = vmatprep.mubr.bf16.mxu0 %v3255_v6  ;;  %1877 = vmatprep.mubr.bf16.mxu1 %v3255_v6  ;;  %v2187_v58 = vrot.slane %v1664_v55, 5  ;;  %s3822_s11 = scalar_lea.hbm %s3876_s3, %s2870_s7 }
  0xd9   : > { %v2188_v49 = vsel %vm3643_vm8, %v2822_v56, %v2187_v58 }
  0xda   : > { %v2824_v61 = vcombine.low %v1955_v52, %v2188_v49 }
  0xde   : > { %2800 = vmatmul.mubr.msk.bf16.vlgmr.msra.gmra.mrb[0].mxu0 %vm221_vm2, %v2796_v11  ;;  %2804 = vmatmul.mubr.msk.bf16.vlgmr.msra.gmra.mrb[0].mxu1 %vm221_vm2, %v2796_v11 }
  0xdf   : > { %2006 = vmatpush1.bf16.msra.mxu0 %v1994_v12  ;;  %2079 = vmatpush1.bf16.msra.mxu1 %v2000_v16 }
  0xe0   : > { %1814 = vmatprep.mubr.bf16.mxu0 %v3255_v6  ;;  %1887 = vmatprep.mubr.bf16.mxu1 %v3255_v6 }
  0xe1   : > { %2226 = vmatprep.subr.bf16.mxu0 %v2218_v59  ;;  %2299 = vmatprep.subr.bf16.mxu1 %v2224_v60 }
  0xe6   : > { %2801 = vmatmul.mubr.msk.bf16.gmra.mrb[4].mxu0 %vm221_vm2, %v2797_v25  ;;  %2805 = vmatmul.mubr.msk.bf16.gmra.mrb[4].mxu1 %vm221_vm2, %v2797_v25 }
  0xe7   : > { %1824 = vmatprep.mubr.bf16.mxu0 %v3255_v6  ;;  %1897 = vmatprep.mubr.bf16.mxu1 %v3255_v6 }
  0xee   : > { %2802 = vmatmul.mubr.msk.bf16.gmra.mrb[8].mxu0 %vm221_vm2, %v2798_v34  ;;  %2806 = vmatmul.mubr.msk.bf16.gmra.mrb[8].mxu1 %vm221_vm2, %v2798_v34 }
  0xef   : > { %1834 = vmatprep.mubr.bf16.mxu0 %v3255_v6  ;;  %1907 = vmatprep.mubr.bf16.mxu1 %v3255_v6 }
  0xf6   : > { %2803 = vmatmul.mubr.msk.bf16.gmra.mrb[12].mxu0 %vm221_vm2, %v2799_v43  ;;  %2807 = vmatmul.mubr.msk.bf16.gmra.mrb[12].mxu1 %vm221_vm2, %v2799_v43 }
  0xf7   : > { %2037 = vmatprep.mubr.bf16.mxu0 %v3255_v6  ;;  %2110 = vmatprep.mubr.bf16.mxu1 %v3255_v6 }
  0xfe   : > { %2814 = vmatmul.mubr.msk.bf16.vlgmr.msra.gmra.mrb[0].mxu0 %vm221_vm2, %v2810_v36  ;;  %2818 = vmatmul.mubr.msk.bf16.vlgmr.msra.gmra.mrb[0].mxu1 %vm221_vm2, %v2810_v36 }
  0xff   : > { %2227 = vmatpush1.bf16.msra.mxu0 %v2215_v44  ;;  %2300 = vmatpush1.bf16.msra.mxu1 %v2221_v45 }
 0x100   : > { %2047 = vmatprep.mubr.bf16.mxu0 %v3255_v6  ;;  %2120 = vmatprep.mubr.bf16.mxu1 %v3255_v6 }
 0x106   : > { %2815 = vmatmul.mubr.msk.bf16.gmra.mrb[4].mxu0 %vm221_vm2, %v2811_v46  ;;  %2819 = vmatmul.mubr.msk.bf16.gmra.mrb[4].mxu1 %vm221_vm2, %v2811_v46 }
 0x107   : > { %2057 = vmatprep.mubr.bf16.mxu0 %v3255_v6  ;;  %2130 = vmatprep.mubr.bf16.mxu1 %v3255_v6 }
 0x10e   : > { %2816 = vmatmul.mubr.msk.bf16.gmra.mrb[8].mxu0 %vm221_vm2, %v2812_v48  ;;  %2820 = vmatmul.mubr.msk.bf16.gmra.mrb[8].mxu1 %vm221_vm2, %v2812_v48 }
 0x10f   : > { %2067 = vmatprep.mubr.bf16.mxu0 %v3255_v6  ;;  %2140 = vmatprep.mubr.bf16.mxu1 %v3255_v6 }
 0x116   : > { %2817 = vmatmul.mubr.msk.bf16.gmra.mrb[12].mxu0 %vm221_vm2, %v2813_v53  ;;  %2821 = vmatmul.mubr.msk.bf16.gmra.mrb[12].mxu1 %vm221_vm2, %v2813_v53 }
 0x117   : > { %2258 = vmatprep.mubr.bf16.mxu0 %v3255_v6  ;;  %2331 = vmatprep.mubr.bf16.mxu1 %v3255_v6 }
 0x11e   : > { %2825 = vmatmul.mubr.msk.bf16.vlgmr.msra.gmra.mrb[0].mxu0 %vm221_vm2, %v2797_v25  ;;  %2829 = vmatmul.mubr.msk.bf16.vlgmr.msra.gmra.mrb[0].mxu1 %vm221_vm2, %v2797_v25 }
 0x11f   : > { %2268 = vmatprep.mubr.bf16.mxu0 %v3255_v6  ;;  %2341 = vmatprep.mubr.bf16.mxu1 %v3255_v6 }
 0x126   : > { %2826 = vmatmul.mubr.msk.bf16.gmra.mrb[4].mxu0 %vm221_vm2, %v2798_v34  ;;  %2830 = vmatmul.mubr.msk.bf16.gmra.mrb[4].mxu1 %vm221_vm2, %v2798_v34 }
 0x127   : > { %2278 = vmatprep.mubr.bf16.mxu0 %v3255_v6  ;;  %2351 = vmatprep.mubr.bf16.mxu1 %v3255_v6 }
 0x12e   : > { %2827 = vmatmul.mubr.msk.bf16.gmra.mrb[8].mxu0 %vm221_vm2, %v2799_v43  ;;  %2831 = vmatmul.mubr.msk.bf16.gmra.mrb[8].mxu1 %vm221_vm2, %v2799_v43 }
 0x12f   : > { %2288 = vmatprep.mubr.bf16.mxu0 %v3255_v6  ;;  %2361 = vmatprep.mubr.bf16.mxu1 %v3255_v6  ;;  %v2420_v6 = vsub.s32 3, %v3335_v5 }
 0x131   : > { %v3766_v8 = vrot.slane %v2404_v0, %v2420_v6 }
 0x136   : > { %2828 = vmatmul.mubr.msk.bf16.gmra.mrb[12].mxu0 %vm221_vm2, %v2824_v61  ;;  %2832 = vmatmul.mubr.msk.bf16.gmra.mrb[12].mxu1 %vm221_vm2, %v2824_v61 }
 0x1f1   : > { %v2260_v9 = vpop.f32.mrb[0].mxu0  ;;  %v2333_v13 = vpop.f32.mrb[0].mxu1 }
 0x1f2   : > { %v2426_v10 = vadd.f32 %v3760_v62, %v2260_v9  ;;  %v2428_v11 = vadd.f32 %v3762_v2, %v2333_v13  ;;  %v2262_v12 = vpop.f32.mrb[1].mxu0  ;;  %v2335_v14 = vpop.f32.mrb[1].mxu1 }
 0x1f3   : > { %v2427_v5 = vadd.f32 %v3764_v7, %v2262_v12  ;;  %v2429_v16 = vadd.f32 %v3766_v8, %v2335_v14  ;;  %v2264_v17 = vpop.f32.mrb[2].mxu0  ;;  %v2337_v18 = vpop.f32.mrb[2].mxu1 }
 0x1f4   : > { %v2458_v57 = vmax.f32 %v2426_v10, 0.0  ;;  %v2460_v59 = vmax.f32 %v2428_v11, 0.0  ;;  %v2430_v60 = vadd.f32 %v3760_v62, %v2264_v17  ;;  %v2432_v19 = vadd.f32 %v3762_v2, %v2337_v18  ;;  %v2266_v20 = vpop.f32.mrb[3].mxu0  ;;  %v2339_v21 = vpop.f32.mrb[3].mxu1 }
 0x1f5   : > { %v2459_v22 = vmax.f32 %v2427_v5, 0.0  ;;  %v2461_v23 = vmax.f32 %v2429_v16, 0.0  ;;  %v2431_v24 = vadd.f32 %v3764_v7, %v2266_v20  ;;  %v2433_v25 = vadd.f32 %v3766_v8, %v2339_v21 }
 0x1f6   : > { %v2462_v26 = vmax.f32 %v2430_v60, 0.0  ;;  %v2464_v27 = vmax.f32 %v2432_v19, 0.0 }
 0x1f7   : > { %v2854_v28 = vpack.c.bf16 %v2459_v22, %v2458_v57  ;;  %v2855_v3 = vpack.c.bf16 %v2461_v23, %v2460_v59  ;;  %v2463_v4 = vmax.f32 %v2431_v24, 0.0  ;;  %v2465_v29 = vmax.f32 %v2433_v25, 0.0 }
 0x1f9   : > { %2618 = vst [vmem:[%s3779_s6] sm:$0xff] %v2854_v28  ;;  %2619 = vst [vmem:[%s3779_s6 + $0x8] sm:$0xff] %v2855_v3  ;;  %v2856_v30 = vpack.c.bf16 %v2463_v4, %v2462_v26  ;;  %v2857_v31 = vpack.c.bf16 %v2465_v29, %v2464_v27  ;;  %v2270_v32 = vpop.f32.mrb[4].mxu0  ;;  %v2343_v33 = vpop.f32.mrb[4].mxu1 }
 0x1fa   : > { %v2434_v34 = vadd.f32 %v3760_v62, %v2270_v32  ;;  %v2436_v35 = vadd.f32 %v3762_v2, %v2343_v33  ;;  %v2272_v37 = vpop.f32.mrb[5].mxu0  ;;  %v2345_v38 = vpop.f32.mrb[5].mxu1 }
 0x1fb   : > { %2620 = vst [vmem:[%s3779_s6 + $0x10] sm:$0xff] %v2856_v30  ;;  %2621 = vst [vmem:[%s3779_s6 + $0x18] sm:$0xff] %v2857_v31  ;;  %v2435_v39 = vadd.f32 %v3764_v7, %v2272_v37  ;;  %v2437_v40 = vadd.f32 %v3766_v8, %v2345_v38  ;;  %v2274_v41 = vpop.f32.mrb[6].mxu0  ;;  %v2347_v43 = vpop.f32.mrb[6].mxu1 }
 0x1fc   : > { %v2466_v36 = vmax.f32 %v2434_v34, 0.0  ;;  %v2468_v44 = vmax.f32 %v2436_v35, 0.0  ;;  %v2438_v45 = vadd.f32 %v3760_v62, %v2274_v41  ;;  %v2440_v46 = vadd.f32 %v3762_v2, %v2347_v43  ;;  %v2276_v15 = vpop.f32.mrb[7].mxu0  ;;  %v2349_v47 = vpop.f32.mrb[7].mxu1 }
 0x1fd   : > { %v2467_v48 = vmax.f32 %v2435_v39, 0.0  ;;  %v2469_v50 = vmax.f32 %v2437_v40, 0.0  ;;  %v2439_v51 = vadd.f32 %v3764_v7, %v2276_v15  ;;  %v2441_v52 = vadd.f32 %v3766_v8, %v2349_v47 }
 0x1fe   : > { %v2470_v53 = vmax.f32 %v2438_v45, 0.0  ;;  %v2472_v54 = vmax.f32 %v2440_v46, 0.0 }
 0x1ff   : > { %v2858_v55 = vpack.c.bf16 %v2467_v48, %v2466_v36  ;;  %v2859_v56 = vpack.c.bf16 %v2469_v50, %v2468_v44  ;;  %v2471_v58 = vmax.f32 %v2439_v51, 0.0  ;;  %v2473_v49 = vmax.f32 %v2441_v52, 0.0 }
 0x201   : > { %2622 = vst [vmem:[%s3779_s6 + $0x20] sm:$0xff] %v2858_v55  ;;  %2623 = vst [vmem:[%s3779_s6 + $0x28] sm:$0xff] %v2859_v56  ;;  %v2860_v61 = vpack.c.bf16 %v2471_v58, %v2470_v53  ;;  %v2861_v42 = vpack.c.bf16 %v2473_v49, %v2472_v54  ;;  %v2280_v63 = vpop.f32.mrb[8].mxu0  ;;  %v2353_v0 = vpop.f32.mrb[8].mxu1 }
 0x202   : > { %v2442_v1 = vadd.f32 %v3760_v62, %v2280_v63  ;;  %v2444_v6 = vadd.f32 %v3762_v2, %v2353_v0  ;;  %v2282_v9 = vpop.f32.mrb[9].mxu0  ;;  %v2355_v13 = vpop.f32.mrb[9].mxu1 }
 0x203   : > { %2624 = vst [vmem:[%s3779_s6 + $0x30] sm:$0xff] %v2860_v61  ;;  %2625 = vst [vmem:[%s3779_s6 + $0x38] sm:$0xff] %v2861_v42  ;;  %v2443_v10 = vadd.f32 %v3764_v7, %v2282_v9  ;;  %v2445_v11 = vadd.f32 %v3766_v8, %v2355_v13  ;;  %v2284_v12 = vpop.f32.mrb[10].mxu0  ;;  %v2357_v14 = vpop.f32.mrb[10].mxu1 }
 0x204   : > { %v2474_v5 = vmax.f32 %v2442_v1, 0.0  ;;  %v2476_v16 = vmax.f32 %v2444_v6, 0.0  ;;  %v2446_v17 = vadd.f32 %v3760_v62, %v2284_v12  ;;  %v2448_v18 = vadd.f32 %v3762_v2, %v2357_v14  ;;  %v2286_v57 = vpop.f32.mrb[11].mxu0  ;;  %v2359_v59 = vpop.f32.mrb[11].mxu1 }
 0x205   : > { %v2475_v60 = vmax.f32 %v2443_v10, 0.0  ;;  %v2477_v19 = vmax.f32 %v2445_v11, 0.0  ;;  %v2447_v20 = vadd.f32 %v3764_v7, %v2286_v57  ;;  %v2449_v21 = vadd.f32 %v3766_v8, %v2359_v59 }
 0x206   : > { %v2478_v22 = vmax.f32 %v2446_v17, 0.0  ;;  %v2480_v23 = vmax.f32 %v2448_v18, 0.0 }
 0x207   : > { %v2862_v24 = vpack.c.bf16 %v2475_v60, %v2474_v5  ;;  %v2863_v25 = vpack.c.bf16 %v2477_v19, %v2476_v16  ;;  %v2479_v26 = vmax.f32 %v2447_v20, 0.0  ;;  %v2481_v27 = vmax.f32 %v2449_v21, 0.0 }
 0x209   : > { %2626 = vst [vmem:[%s3779_s6 + $0x40] sm:$0xff] %v2862_v24  ;;  %2627 = vst [vmem:[%s3779_s6 + $0x48] sm:$0xff] %v2863_v25  ;;  %v2864_v28 = vpack.c.bf16 %v2479_v26, %v2478_v22  ;;  %v2865_v3 = vpack.c.bf16 %v2481_v27, %v2480_v23  ;;  %v2290_v4 = vpop.f32.mrb[12].mxu0  ;;  %v2363_v29 = vpop.f32.mrb[12].mxu1 }
 0x20a   : > { %v2450_v30 = vadd.f32 %v3760_v62, %v2290_v4  ;;  %v2452_v31 = vadd.f32 %v3762_v2, %v2363_v29  ;;  %v2292_v32 = vpop.f32.mrb[13].mxu0  ;;  %v2365_v33 = vpop.f32.mrb[13].mxu1 }
 0x20b   : > { %2628 = vst [vmem:[%s3779_s6 + $0x50] sm:$0xff] %v2864_v28  ;;  %2629 = vst [vmem:[%s3779_s6 + $0x58] sm:$0xff] %v2865_v3  ;;  %v2451_v34 = vadd.f32 %v3764_v7, %v2292_v32  ;;  %v2453_v35 = vadd.f32 %v3766_v8, %v2365_v33  ;;  %v2294_v37 = vpop.f32.mrb[14].mxu0  ;;  %v2367_v38 = vpop.f32.mrb[14].mxu1 }
 0x20c   : > { %v2482_v39 = vmax.f32 %v2450_v30, 0.0  ;;  %v2484_v40 = vmax.f32 %v2452_v31, 0.0  ;;  %v2454_v41 = vadd.f32 %v3760_v62, %v2294_v37  ;;  %v2456_v43 = vadd.f32 %v3762_v2, %v2367_v38  ;;  %v2296_v36 = vpop.f32.mrb[15].mxu0  ;;  %v2369_v44 = vpop.f32.mrb[15].mxu1 }
 0x20d   : > { %v2483_v45 = vmax.f32 %v2451_v34, 0.0  ;;  %v2485_v46 = vmax.f32 %v2453_v35, 0.0  ;;  %v2455_v15 = vadd.f32 %v3764_v7, %v2296_v36  ;;  %v2457_v47 = vadd.f32 %v3766_v8, %v2369_v44 }
 0x20e   : > { %v2486_v48 = vmax.f32 %v2454_v41, 0.0  ;;  %v2488_v50 = vmax.f32 %v2456_v43, 0.0 }
 0x20f   : > { %v2866_v62 = vpack.c.bf16 %v2483_v45, %v2482_v39  ;;  %v2867_v2 = vpack.c.bf16 %v2485_v46, %v2484_v40  ;;  %v2487_v51 = vmax.f32 %v2455_v15, 0.0  ;;  %v2489_v52 = vmax.f32 %v2457_v47, 0.0 }
 0x211   : > { %2630 = vst [vmem:[%s3779_s6 + $0x60] sm:$0xff] %v2866_v62  ;;  %2631 = vst [vmem:[%s3779_s6 + $0x68] sm:$0xff] %v2867_v2  ;;  %v2868_v7 = vpack.c.bf16 %v2487_v51, %v2486_v48  ;;  %v2869_v8 = vpack.c.bf16 %v2489_v52, %v2488_v50 }
 0x213   : > { %2632 = vst [vmem:[%s3779_s6 + $0x70] sm:$0xff] %v2868_v7  ;;  %2633 = vst [vmem:[%s3779_s6 + $0x78] sm:$0xff] %v2869_v8 }
 0x214   : > { %3203 = shalt.err (!%p3200_p3)
}
 0x215   : > { %s3204_s25 = scalar_lea.hbm %s3822_s11, 2048  ;;  %s3208_s28 = scalar_lea.hbm %s3876_s3, 4096 }
 0x216   : > { %p3205_p4 = scmp.ne.s32.totalorder %s3822_s11, %s3204_s25  ;;  %p3209_p9 = scmp.lt.u32.totalorder %s3822_s11, %s3876_s3 }
 0x217   : > { %p3210_p10 = scmp.lt.u32.totalorder %s3208_s28, %s3204_s25  ;;  %p3212_p12 = scmp.lt.u32.totalorder %s3204_s25, %s3822_s11 }
 0x218   : > { %p3206_p7 = pnand %p3205_p4, %p3318_p5 }
 0x219   : > { %p3211_p11 = por %p3210_p10, %p3209_p9 }
 0x21a   : > { %p3207_p8 = pneg %p3206_p7 }
 0x21b   : > { %p3213_p13 = por %p3212_p12, %p3211_p11 }
 0x21d   : > { %p3214_p0 = pnand %p3213_p13, %p3207_p8 }
 0x21f   : > { %3217 = shalt.err (!%p3214_p0)
}
 0x220   : > { %s3258_s4 = smov 256   ;;  %s3259_s5 = smov 16  }
 0x221   : > { %3128 = dma.vmem_to_hbm [thread:$0]  (%p3318_p5), %s3824_s8, 2048, %s3822_s11, %s3832_s16, %s3258_s4, %s3258_s4, %s3259_s5  }
 0x222 PF: > { %p3134_p1 = scmp.ge.s32.totalorder %s3252_s15, 2  ;;  %s2663_s6 = sand.u32 1, %s3240_s12  }
 0x223   : > { %s2664_s7 = scalar_lea.sflag [#allocation3], %s2663_s6 }
 0x224   : > { %p3131_p2 = pnand %p3134_p1, %p3322_p6 }
 0x226   : > { %3235 = dma.done.wait (!%p3131_p2), %s2664_s7, 2048  }
 0x227   : > { %3237 = vsyncadd (!%p3131_p2), %s2664_s7, 4294965248  ;;  %p13_p3 = scmp.ge.s32.totalorder %s3305_s18, 4   ;;  %s3883_s12 = smov %s3244_s13 }
 0x228   : > { %s3884_s13 = smov %s3248_s14  ;;  %s3885_s14 = smov %s3316_s21 }
 0x229   : > { %s3886_s15 = smov %s3305_s18  ;;  %15 = sbr.rel (!%p13_p3) target bundleno = 3 (0x3), region = 75 }
 0x230   :  { %2669 = vsyncpa [#allocation3], 1 }
 0x231   :  { %2671 = vsyncpa [#allocation3 + $0x1], 1 }

</bundles_post_ra>
